<compile_context>
chip_gen: v5e
topology: v5e:2x2
jax: 0.10.0
libtpu: 0.0.40
codegen_flags: <defaults>
</compile_context>

<pallas_src>
import jax
import jax.numpy as jnp
import numpy as np
from jax.experimental import pallas as pl
from jax.experimental.pallas import tpu as pltpu


def se_plus_kernel(w1t_ref, w2t_ref, x_ref, o_ref):
    # w1t_ref: (C, R) f32   fc1 weight, pre-transposed in the wrapper
    # w2t_ref: (R, C) f32   fc2 weight, pre-transposed in the wrapper
    # x_ref  : (Nb, C, HW)  lane-dense input block
    # o_ref  : (Nb, C, HW)  lane-dense output block
    x = x_ref[...].astype(jnp.float32)                          # (Nb, C, HW)

    # Squeeze: global average pool over the spatial (lane) axis.
    pooled = jnp.mean(x, axis=-1)                               # (Nb, C)

    # Excite: Linear -> ReLU -> Linear -> Sigmoid (both bias-free).
    h = jnp.dot(pooled, w1t_ref[...],
                preferred_element_type=jnp.float32)             # (Nb, R)
    h = jnp.maximum(h, 0.0)
    s = jax.nn.sigmoid(
        jnp.dot(h, w2t_ref[...],
                preferred_element_type=jnp.float32))            # (Nb, C)

    # Gate: broadcast per-channel scale over the lane-dense spatial axis.
    o_ref[...] = (x * s[:, :, None]).astype(o_ref.dtype)


def _pick_block_n(n, c, hw, itemsize):
    """Largest divisor of n giving a <=~1 MiB block and (if possible) >=2 grid steps."""
    budget = 1 << 20                                   # ~1 MiB per input block
    cap = max(1, budget // max(c * hw * itemsize, 1))
    if n >= 2:
        cap = min(cap, max(1, n // 2))                 # keep both v7x TCs busy
    cap = min(cap, n)
    best = 1
    for d in range(1, cap + 1):
        if n % d == 0:
            best = d
    return best


def se_layer_plus(x, fc1_weight, fc2_weight, *, block_n=None):
    """x: (N, C, H, W); fc1_weight: (R, C); fc2_weight: (C, R) (PyTorch Linear layout)."""
    N, C, H, W = x.shape
    HW = H * W
    R = fc1_weight.shape[0]

    if block_n is None:
        block_n = _pick_block_n(N, C, HW, x.dtype.itemsize)
    assert N % block_n == 0

    x2 = x.reshape(N, C, HW)                                    # lane-dense view (free)
    w1t = fc1_weight.T.astype(jnp.float32)                      # (C, R)
    w2t = fc2_weight.T.astype(jnp.float32)                      # (R, C)

    out = pl.pallas_call(
        se_plus_kernel,
        out_shape=jax.ShapeDtypeStruct((N, C, HW), x.dtype),
        grid=(N // block_n,),
        in_specs=[
            pl.BlockSpec((C, R), lambda n: (0, 0)),             # fc1^T (resident)
            pl.BlockSpec((R, C), lambda n: (0, 0)),             # fc2^T (resident)
            pl.BlockSpec((block_n, C, HW), lambda n: (n, 0, 0)),
        ],
        out_specs=pl.BlockSpec((block_n, C, HW), lambda n: (n, 0, 0)),
        compiler_params=pltpu.CompilerParams(
            dimension_semantics=("parallel",)),
    )(w1t, w2t, x2)
    return out.reshape(N, C, H, W)


def reference(x, fc1_weight, fc2_weight):
    """Pure-JAX reference matching the PyTorch SELayer_Plus forward."""
    xf = x.astype(jnp.float32)
    pooled = jnp.mean(xf, axis=(2, 3))                          # (N, C)
    h = jnp.maximum(pooled @ fc1_weight.astype(jnp.float32).T, 0.0)   # (N, R)
    s = jax.nn.sigmoid(h @ fc2_weight.astype(jnp.float32).T)          # (N, C)
    return (xf * s[:, :, None, None]).astype(x.dtype)


if __name__ == "__main__":
    key = jax.random.PRNGKey(0)
    kx, k1, k2 = jax.random.split(key, 3)

    # SELayer_Plus(channel=4, reduction=32) -> reduced_channels = max(4//32, 4) = 4
    N, C, H, W = 2, 4, 16, 16
    R = max(C // 32, 4)

    x = jax.random.normal(kx, (N, C, H, W), dtype=jnp.float32)
    fc1_weight = jax.random.normal(k1, (R, C), dtype=jnp.float32) * 0.5   # Linear(C->R)
    fc2_weight = jax.random.normal(k2, (C, R), dtype=jnp.float32) * 0.5   # Linear(R->C)

    out = jax.block_until_ready(se_layer_plus(x, fc1_weight, fc2_weight))
    ref = jax.block_until_ready(reference(x, fc1_weight, fc2_weight))

    np.testing.assert_allclose(np.asarray(out), np.asarray(ref),
                               rtol=1e-5, atol=1e-5)
    print("KERNEL_OK")
</pallas_src>

<mosaic_0001>
module attributes {stable_mosaic.version = 11 : i64} {
  func.func @se_plus_kernel(%arg0: i32, %arg1: memref<4x4xf32, #tpu.memory_space<vmem>>, %arg2: memref<4x4xf32, #tpu.memory_space<vmem>>, %arg3: memref<1x4x256xf32, #tpu.memory_space<vmem>>, %arg4: memref<1x4x256xf32, #tpu.memory_space<vmem>>) attributes {dimension_semantics = [#tpu.dimension_semantics<parallel>], iteration_bounds = array<i64: 2>, scalar_prefetch = 0 : i64, scratch_operands = 0 : i64, tpu.core_type = #tpu.core_type<tc>, window_params = [{pipeline_mode = #tpu.pipeline_mode<synchronous>, transform_indices = @transform_0, window_bounds = array<i64: 4, 4>}, {pipeline_mode = #tpu.pipeline_mode<synchronous>, transform_indices = @transform_1, window_bounds = array<i64: 4, 4>}, {transform_indices = @transform_2, window_bounds = array<i64: 1, 4, 256>}, {transform_indices = @transform_3, window_bounds = array<i64: 1, 4, 256>}]} {
    %c0 = arith.constant 0 : index
    %c0_0 = arith.constant 0 : index
    %c0_1 = arith.constant 0 : index
    %0 = vector.load %arg3[%c0, %c0_0, %c0_1] : memref<1x4x256xf32, #tpu.memory_space<vmem>>, vector<1x4x256xf32>
    %cst = arith.constant dense<0.000000e+00> : vector<1x4xf32>
    %1 = vector.multi_reduction <add>, %0, %cst [2] : vector<1x4x256xf32> to vector<1x4xf32>
    %cst_2 = arith.constant 2.560000e+02 : f32
    %2 = vector.broadcast %cst_2 : f32 to vector<1x4xf32>
    %3 = arith.divf %1, %2 : vector<1x4xf32>
    %c0_3 = arith.constant 0 : index
    %c0_4 = arith.constant 0 : index
    %4 = vector.load %arg1[%c0_3, %c0_4] : memref<4x4xf32, #tpu.memory_space<vmem>>, vector<4x4xf32>
    %cst_5 = arith.constant dense<0.000000e+00> : vector<1x4xf32>
    %5 = tpu.matmul %3, %4, %cst_5 {dimension_numbers = #tpu.dot_dimension_numbers<[1], [0], [0], [1], [0, 0, 1, 1], [], []>} : vector<1x4xf32>, vector<4x4xf32>, vector<1x4xf32> -> vector<1x4xf32>
    %cst_6 = arith.constant 0.000000e+00 : f32
    %6 = vector.broadcast %cst_6 : f32 to vector<1x4xf32>
    %7 = arith.maximumf %5, %6 : vector<1x4xf32>
    %c0_7 = arith.constant 0 : index
    %c0_8 = arith.constant 0 : index
    %8 = vector.load %arg2[%c0_7, %c0_8] : memref<4x4xf32, #tpu.memory_space<vmem>>, vector<4x4xf32>
    %cst_9 = arith.constant dense<0.000000e+00> : vector<1x4xf32>
    %9 = tpu.matmul %7, %8, %cst_9 {dimension_numbers = #tpu.dot_dimension_numbers<[1], [0], [0], [1], [0, 0, 1, 1], [], []>} : vector<1x4xf32>, vector<4x4xf32>, vector<1x4xf32> -> vector<1x4xf32>
    %10 = arith.negf %9 : vector<1x4xf32>
    %11 = math.exp %10 : vector<1x4xf32>
    %cst_10 = arith.constant 1.000000e+00 : f32
    %12 = vector.broadcast %cst_10 : f32 to vector<1x4xf32>
    %13 = arith.addf %12, %11 : vector<1x4xf32>
    %14 = arith.divf %12, %13 : vector<1x4xf32>
    %15 = vector.shape_cast %14 : vector<1x4xf32> to vector<1x4x1xf32>
    %16 = vector.broadcast %15 : vector<1x4x1xf32> to vector<1x4x256xf32>
    %17 = arith.mulf %0, %16 : vector<1x4x256xf32>
    %c0_11 = arith.constant 0 : index
    %c0_12 = arith.constant 0 : index
    %c0_13 = arith.constant 0 : index
    %18 = vector.load %arg4[%c0_11, %c0_12, %c0_13] : memref<1x4x256xf32, #tpu.memory_space<vmem>>, vector<1x4x256xf32>
    tpu.vector_store %arg4[%c0_11, %c0_12, %c0_13], %17 {strides = array<i32>} : memref<1x4x256xf32, #tpu.memory_space<vmem>>, vector<1x4x256xf32>,
    return
  }
  func.func @transform_0(%arg0: i32) -> (i32, i32) {
    %c0_i32 = arith.constant 0 : i32
    %c0_i32_0 = arith.constant 0 : i32
    %c0_i32_1 = arith.constant 0 : i32
    return %c0_i32, %c0_i32_0 : i32, i32
  }
  func.func @transform_1(%arg0: i32) -> (i32, i32) {
    %c0_i32 = arith.constant 0 : i32
    %c0_i32_0 = arith.constant 0 : i32
    %c0_i32_1 = arith.constant 0 : i32
    return %c0_i32, %c0_i32_0 : i32, i32
  }
  func.func @transform_2(%arg0: i32) -> (i32, i32, i32) {
    %c0_i32 = arith.constant 0 : i32
    %c0_i32_0 = arith.constant 0 : i32
    %c0_i32_1 = arith.constant 0 : i32
    return %arg0, %c0_i32, %c0_i32_0 : i32, i32, i32
  }
  func.func @transform_3(%arg0: i32) -> (i32, i32, i32) {
    %c0_i32 = arith.constant 0 : i32
    %c0_i32_0 = arith.constant 0 : i32
    %c0_i32_1 = arith.constant 0 : i32
    return %arg0, %c0_i32, %c0_i32_0 : i32, i32, i32
  }
}

</mosaic_0001>

<bundles_post_ra>
// kernel: tpu_custom_call.1
= control target key start
LH: loop header
LB: loop body
LE: loop exit
PB: predicated region body
PF: predicated region fallthrough
CT: control target
= control target key end

     0   :  { %8 = vsyncpa [#allocation3], 0  ;;  %s885_s0 = inlined_call_operand.hbm [shape: f32[4,4], index: 0, kind: input, shape index: {}]   ;;  %s886_s1 = inlined_call_operand.hbm [shape: f32[4,4], index: 1, kind: input, shape index: {}]   ;;  %s887_s2 = inlined_call_operand.hbm [shape: f32[2,4,256], index: 2, kind: input, shape index: {}]   ;;  %s888_s3 = inlined_call_operand.hbm [shape: f32[2,4,256], index: 3, kind: output, shape index: {}]  }
   0x1   :  { %9 = vsyncpa [#allocation6], 0 }
   0x2   :  { %10 = vsyncpa [#allocation4], 0 }
   0x3   :  { %12 = vsyncpa [#allocation4 + $0x1], 0  ;;  %s727_s12 = smov 0   ;;  %s729_s13 = smov 0  }
   0x4   :  { %s731_s14 = smov 0   ;;  %s733_s15 = smov 0  }
   0x5 LB: > { %s748_s16 = sadd.s32 4294967295, %s701_s15   ;;  %s436_s17 = sadd.s32 4294967294, %s701_s15   ;;  %s701_s15 = sphi %s733_s15, %s898_s15   ;;  %s697_s14 = sphi %s731_s14, %s897_s14   ;;  %s693_s13 = sphi %s729_s13, %s896_s13   ;;  %s689_s12 = sphi %s727_s12, %s895_s12  }
   0x6   : > { %p80_p0 = scmp.ne.s32.totalorder %s693_s13, %s689_s12  ;;  %p81_p1 = scmp.eq.s32.totalorder %s748_s16, 0 }
   0x7   : > { %p104_p2 = scmp.eq.s32.totalorder %s748_s16, 1  ;;  %p110_p3 = scmp.eq.s32.totalorder %s436_s17, 1 }
   0x8   : > { %p757_p4 = por %p81_p1, %p80_p0  ;;  %p437_p5 = scmp.ge.s32.totalorder %s701_s15, 1 }
   0x9   : > { %p762_p6 = por %p110_p3, %p80_p0  ;;  %p117_p7 = scmp.lt.s32.totalorder %s701_s15, 3 }
   0xa   : > { %s129_s22 = sshll.u32 %s885_s0, 4  ;;  %s703_s24 = smov [#allocation2]   ;;  %s130_s22 = int_to_ptr.hbm [resolvable:$true] %s129_s22 }
   0xb   : > { %p770_p8 = pnand %p437_p5, %p117_p7  ;;  %s131_s25 = sshll.u32 %s703_s24, 4  ;;  %s132_s25 = int_to_ptr.vmem [resolvable:$true] %s131_s25 }
   0xc   : > { %s141_s28 = sshll.u32 %s886_s1, 4  ;;  %s704_s29 = smov [#allocation5]   ;;  %s142_s28 = int_to_ptr.hbm [resolvable:$true] %s141_s28 }
   0xd   : > { %p473_p10 = pneg %p770_p8  ;;  %s143_s30 = sshll.u32 %s704_s29, 4  ;;  %s144_s30 = int_to_ptr.vmem [resolvable:$true] %s143_s30 }
   0xe   : > { %s783_s4 = sadd.s32 1, %s701_s15   ;;  %s67_s5 = sadd.s32 1, %s697_s14 }
   0xf   : > { %p474_p11 = pnand %p473_p10, %p81_p1  ;;  %s64_s6 = ssub.s32 %s701_s15, %s783_s4 }
  0x10   : > { %p74_p12 = scmp.ne.s32.totalorder %s697_s14, %s693_s13  ;;  %p65_p13 = scmp.eq.s32.totalorder %s64_s6, 0 }
  0x11   : > { %476 = dma.hbm_to_vmem [thread:$0]  (!%p474_p11), %s130_s22, 64, %s132_s25, [#allocation3]  }
  0x12   : > { %479 = dma.hbm_to_vmem [thread:$0]  (!%p474_p11), %s142_s28, 64, %s144_s30, [#allocation6]  }
  0x13   : > { %p75_p0 = scmp.eq.s32.totalorder %s701_s15, 0  ;;  %p793_p3 = por %p104_p2, %p74_p12 }
  0x14   : > { %s798_s8 = scalar_select %p65_p13, %s697_s14, %s67_s5  }
  0x15   : > { %p76_p5 = por %p75_p0, %p74_p12  ;;  %p490_p7 = scmp.lt.s32.totalorder %s701_s15, 2 }
  0x16   : > { %s154_s9 = sand.u32 1, %s701_s15   ;;  %s156_s10 = sand.u32 1, %s697_s14  }
  0x17   : > { %s441_s11 = sshll.u32 %s156_s10, 3  ;;  %s459_s17 = sshll.u32 %s701_s15, 3 }
  0x18   : > { %s163_s22 = scalar_lea.hbm %s887_s2, %s459_s17  ;;  %s158_s25 = scalar_lea.vmem [#allocation7], %s441_s11 }
  0x19   : > { %s165_s24 = sshll.u32 %s163_s22, 4  ;;  %s167_s26 = sshll.u32 %s158_s25, 4  ;;  %s166_s24 = int_to_ptr.hbm [resolvable:$true] %s165_s24  ;;  %s168_s26 = int_to_ptr.vmem [resolvable:$true] %s167_s26 }
  0x1a   : > { %p807_p2 = pnand %p490_p7, %p76_p5  ;;  %s155_s28 = scalar_lea.sflag [#allocation3], %s154_s9 }
  0x1b   : > { %s597_s29 = sshra.s32 %s166_s24, 4  ;;  %s604_s10 = scalar_lea.hbm %s887_s2, 16  ;;  %s598_s29 = int_to_ptr.hbm [resolvable:$true] %s597_s29 }
  0x1c   : > { %s599_s30 = scalar_lea.hbm %s598_s29, 8  ;;  %p601_p11 = pneg %p807_p2 }
  0x1d   : > { %p600_p10 = scmp.ne.s32.totalorder %s598_s29, %s599_s30  ;;  %p605_p0 = scmp.lt.s32.totalorder %s598_s29, %s887_s2 }
  0x1e   : > { %p606_p5 = scmp.lt.s32.totalorder %s604_s10, %s599_s30 }
  0x1f   : > { %p602_p12 = pnand %p601_p11, %p600_p10 }
  0x20   : > { %p607_p7 = por %p606_p5, %p605_p0 }
  0x21   : > { %p603_p13 = pneg %p602_p12 }
  0x23   : > { %p608_p9 = pnand %p607_p7, %p603_p13 }
  0x25   : > { %611 = shalt.err (!%p608_p9)
}
  0x26   : > { %483 = dma.hbm_to_vmem [thread:$0]  (!%p807_p2), %s166_s24, 128, %s168_s26, %s155_s28  }
  0x27   : > { %176 = sbr.rel (%p770_p8) target bundleno = 589 (0x24d), region = 32 }
  0x2c   : > { %672 = dma.done.wait (%p81_p1), [#allocation3], 64  }
  0x2d   : > { %674 = vsyncadd (%p81_p1), [#allocation3], 4294967232 }
  0x2e   : > { %676 = dma.done.wait (%p81_p1), [#allocation6], 64  }
  0x2f   : > { %678 = vsyncadd (%p81_p1), [#allocation6], 4294967232  ;;  %s188_s9 = sand.u32 1, %s748_s16   ;;  %s190_s20 = sand.u32 1, %s693_s13  }
  0x30   : > { %s835_s23 = sshll.u32 %s190_s20, 3  ;;  %s189_s21 = scalar_lea.sflag [#allocation3], %s188_s9 }
  0x31   : > { %s192_s22 = scalar_lea.vmem [#allocation7], %s835_s23 }
  0x32   : > { %680 = dma.done.wait (%p757_p4), %s189_s21, 128  }
  0x33   : > { %682 = vsyncadd (%p757_p4), %s189_s21, 4294967168  ;;  %v842_v0 = vld [vmem:[%s192_s22] sm:$0xff]  ;;  %vm223_vm0 = vcmask 1043456   ;;  %v237_v6 = vld [vmem:[#allocation2] sm:$0xf]  ;;  %v705_v7 = vmov 256.0   ;;  %v239_v13 = vlaneseq }
  0x34   : > { %218 = vst [vmem:[#allocation1] ss:$2 sm:$0xff] %v842_v0  ;;  %449 = vmatpush.msk.msra.mxu0 %vm223_vm0, %v237_v6  ;;  %531 = vrcp.f32 %v705_v7  ;;  %vm242_vm2 = vcmask 31744   ;;  %v269_v19 = vld [vmem:[#allocation5] sm:$0xf]  ;;  %s460_s18 = sshll.u32 %s748_s16, 3 }
  0x35   : > { %v240_v15 = vand.u32 127, %v239_v13  ;;  %451 = vmatpush.msk.msra.mxu1 %vm223_vm0, %v269_v19  ;;  %v317_v22 = vshrl.u32 %v239_v13, 7  ;;  %v706_v38 = vmov 839922192   ;;  %s342_s26 = scalar_lea.hbm %s888_s3, %s460_s18  ;;  %s215_s27 = scalar_lea.vmem [#allocation8], %s835_s23 }
  0x36   : > { %v324_v39 = vunpack.c.l.s4 %v706_v38  ;;  %s344_s28 = sshll.u32 %s215_s27, 4  ;;  %s346_s29 = sshll.u32 %s342_s26, 4  ;;  %s345_s28 = int_to_ptr.vmem [resolvable:$true] %s344_s28  ;;  %s347_s29 = int_to_ptr.hbm [resolvable:$true] %s346_s29 }
  0x37   : > { %530 = vset.pattern.permute.xlu0 %v317_v22  ;;  %s331_s30 = scalar_lea.sflag [#allocation4], %s190_s20  ;;  %s641_s5 = sshra.s32 %s347_s29, 4  ;;  %s642_s5 = int_to_ptr.hbm [resolvable:$true] %s641_s5 }
  0x38   : > { %v325_v40 = vunpack.c.0.s8 %v324_v39  ;;  %s643_s16 = scalar_lea.hbm %s642_s5, 8  ;;  %s647_s11 = scalar_lea.hbm %s888_s3, 16 }
  0x39   : > { %p644_p1 = scmp.ne.s32.totalorder %s642_s5, %s643_s16  ;;  %p648_p9 = scmp.lt.s32.totalorder %s642_s5, %s888_s3 }
  0x3a   : > { %v532_v8 = vpop.eup %531  ;;  %p649_p2 = scmp.lt.s32.totalorder %s647_s11, %s643_s16 }
  0x3b   : > { %v219_v1 = vld.sshfl [vmem:[#allocation1] sm:$0xff pattern:$0x75316420]  ;;  %v220_v2 = vld.sshfl [vmem:[#allocation1 + $0x8] sm:$0xff pattern:$0x75316420]  ;;  %vm234_vm1 = vweird.f32 %v532_v8  ;;  %p645_p4 = pnand %p644_p1, %p793_p3 }
  0x3c   : > { %v224_v3 = vsel %vm223_vm0, %v219_v1, 0.0  ;;  %v225_v4 = vsel %vm223_vm0, %v220_v2, 0.0  ;;  %v230_v9 = vmul.f32 256.0, %v532_v8  ;;  %p650_p10 = por %p649_p2, %p648_p9 }
  0x3d   : > { %v226_v5 = vadd.f32 %v225_v4, %v224_v3  ;;  %p646_p8 = pneg %p645_p4 }
  0x3e   : > { %v231_v10 = vsub.f32 1.0, %v230_v9 }
  0x3f   : > { %227 = vadd.xlane.f32.xlu0 %v226_v5  ;;  %p651_p11 = pnand %p650_p10, %p646_p8 }
  0x40   : > { %v232_v11 = vmul.f32 %v532_v8, %v231_v10 }
  0x42   : > { %v233_v12 = vadd.f32 %v532_v8, %v232_v11 }
  0x44   : > { %v235_v14 = vsel %vm234_vm1, %v532_v8, %v233_v12 }
  0xb2   : > { %v228_v16 = vpop.xlane.xlu0 %227 }
  0xb3   : > { %v236_v17 = vmul.f32 %v235_v14, %v228_v16 }
  0xb5   : > { %v241_v18 = vperm.slane %v236_v17, %v240_v15 }
  0xb7   : > { %450 = vmatmul.msk.f32.vlgmr.msra.gmra.mxu0 %vm242_vm2, %v241_v18 }
 0x134   : > { %v265_v20 = vpop.f32.mrf.mxu0 }
 0x135   : > { %v268_v21 = vmax.f32 %v265_v20, 0.0 }
 0x137   : > { %452 = vmatmul.msk.f32.vlgmr.msra.gmra.mxu1 %vm242_vm2, %v268_v21 }
 0x1b4   : > { %v293_v23 = vpop.f32.mrf.mxu1 }
 0x1b5   : > { %v453_v24 = vmul.f32 -1.442695, %v293_v23 }
 0x1b7   : > { %533 = vpow2.f32 %v453_v24 }
 0x1bd   : > { %v534_v25 = vpop.eup %533 }
 0x1be   : > { %v299_v26 = vadd.f32 1.0, %v534_v25 }
 0x1c0   : > { %535 = vrcp.f32 %v299_v26  ;;  %v311_v30 = vand.u32 2147483648, %v299_v26  ;;  %v309_v32 = vand.u32 2147483647, %v299_v26  ;;  %vm305_vm4 = vweird.f32 %v299_v26 }
 0x1c2   : > { %v312_v34 = vor.u32 1.1754944e-38, %v311_v30  ;;  %vm310_vm6 = vcmp.eq.f32.partialorder %v309_v32, 8.507059e+37 }
 0x1c6   : > { %v536_v27 = vpop.eup %535 }
 0x1c7   : > { %v301_v28 = vmul.f32 %v536_v27, %v299_v26  ;;  %vm306_vm3 = vweird.f32 %v536_v27 }
 0x1c8   : > { %vm307_vm5 = vmor %vm305_vm4, %vm306_vm3 }
 0x1c9   : > { %v302_v29 = vsub.f32 1.0, %v301_v28 }
 0x1cb   : > { %v303_v31 = vmul.f32 %v536_v27, %v302_v29 }
 0x1cd   : > { %v304_v33 = vadd.f32 %v536_v27, %v303_v31 }
 0x1cf   : > { %v308_v35 = vsel %vm307_vm5, %v536_v27, %v304_v33 }
 0x1d0   : > { %v313_v36 = vsel %vm310_vm6, %v312_v34, %v308_v35 }
 0x1d1   : > { %v315_v37 = vperm.slane %v313_v36, 0 }
 0x1d3   : > { %320 = vperm.xlu0 %530, %v315_v37  }
 0x245   : > { %v321_v41 = vpop.permute.xlu0 %320 }
 0x246   : > { %v326_v42 = vperm.slane %v321_v41, %v325_v40 }
 0x248   : > { %v328_v43 = vmul.f32 %v326_v42, %v842_v0 }
 0x24a   : > { %329 = vst [vmem:[%s215_s27] sm:$0xff] %v328_v43 }
 0x24b   : > { %654 = shalt.err (!%p651_p11)
}
 0x24c   : > { %471 = dma.vmem_to_hbm [thread:$0]  (%p793_p3), %s345_s28, 128, %s347_s29, %s331_s30  }
 0x24d PF: > { %s358_s20 = sand.u32 1, %s689_s12   ;;  %p894_p12 = scmp.ge.s32.totalorder %s701_s15, 2 }
 0x24e   : > { %s359_s23 = scalar_lea.sflag [#allocation4], %s358_s20 }
 0x24f   : > { %p485_p13 = pnand %p894_p12, %p762_p6 }
 0x251   : > { %p486_p0 = pneg %p485_p13 }
 0x253   : > { %684 = dma.done.wait (%p486_p0), %s359_s23, 128  }
 0x254   : > { %686 = vsyncadd (%p486_p0), %s359_s23, 4294967168  ;;  %p15_p5 = scmp.ge.s32.totalorder %s783_s4, 4   ;;  %s895_s12 = smov %s693_s13 }
 0x255   : > { %s896_s13 = smov %s697_s14  ;;  %s897_s14 = smov %s798_s8 }
 0x256   : > { %s898_s15 = smov %s783_s4  ;;  %17 = sbr.rel (!%p15_p5) target bundleno = 5 (0x5), region = 84 }
 0x25b   :  { %365 = vsyncpa [#allocation3], 1 }
 0x25c   :  { %367 = vsyncpa [#allocation3 + $0x1], 1 }
 0x25d   :  { %368 = vsyncpa [#allocation6], 1 }
 0x25e   :  { %369 = vsyncpa [#allocation4], 1 }
 0x25f   :  { %371 = vsyncpa [#allocation4 + $0x1], 1 }

</bundles_post_ra>
